<compile_context>
chip_gen: v6e
topology: v6e:2x2x1
jax: 0.10.0
libtpu: 0.0.40
codegen_flags: <defaults>
</compile_context>

<pallas_src>
import functools

import jax
import jax.numpy as jnp
from jax.experimental import pallas as pl
from jax.experimental.pallas import tpu as pltpu

LANE = 128               # lane width: channel dims padded to multiples of this
MAX_TM = 1024            # row tile of A @ H
MAX_TK = 512             # reduction (column) tile of A @ H
FUSE_MAX_NODES = 1024    # whole-graph fused (linear+spmm) path when n_pad <= this


def _round_up(x, m):
    return (x + m - 1) // m * m


def _pad_to(x, shape):
    pads = [(0, t - s) for s, t in zip(x.shape, shape)]
    return jnp.pad(x, pads)


def _vmem_limit_bytes():
    # Per-generation budget: ~75% of physical VMEM, capped at 96 MiB.
    # v5e/v6e (128 MiB physical) -> 96 MiB; v7x (64 MiB physical) -> 48 MiB.
    try:
        cap = int(pltpu.get_tpu_info().vmem_capacity_bytes)
    except Exception:
        cap = 64 * 1024 * 1024
    return int(min(cap * 3 // 4, 96 * 1024 * 1024))


def _largest_divisor_tile(n_pad, max_tile):
    """Largest multiple of LANE that divides n_pad and is <= max_tile."""
    q = n_pad // LANE
    best = 1
    for d in range(1, max_tile // LANE + 1):
        if q % d == 0:
            best = d
    return best * LANE


def _choose_padding(num_nodes):
    """Pad N to a multiple of 128; allow <=12.5% extra padding to reach a
    coarser granularity (bigger tiles, fewer ~0.35us grid steps) without a
    dense-A bandwidth blow-up."""
    base = _round_up(num_nodes, LANE)
    n_pad = base
    for g in (MAX_TM, 512, 256):
        cand = _round_up(num_nodes, g)
        if cand <= base + base // 8:
            n_pad = cand
            break
    return n_pad


# ----------------------------------------------------------------------------
# Kernel A (small graphs): out = (relu?)(A @ (X @ W + b)) in one call
# ----------------------------------------------------------------------------
def _fused_layer_kernel(a_ref, x_ref, w_ref, b_ref, o_ref, *, relu):
    h = jnp.dot(x_ref[...], w_ref[...], preferred_element_type=jnp.float32)
    h = (h + b_ref[...]).astype(a_ref.dtype)
    out = jnp.dot(a_ref[...], h, preferred_element_type=jnp.float32)
    if relu:
        out = jnp.maximum(out, 0.0)
    o_ref[...] = out.astype(o_ref.dtype)


def fused_layer_pallas(A, X, W_t, b2, *, relu, out_dtype, vmem_limit):
    Np = A.shape[0]
    Cout = W_t.shape[1]
    kernel = functools.partial(_fused_layer_kernel, relu=relu)
    return pl.pallas_call(
        kernel,
        out_shape=jax.ShapeDtypeStruct((Np, Cout), out_dtype),
        compiler_params=pltpu.CompilerParams(vmem_limit_bytes=vmem_limit),
    )(A, X, W_t, b2)


# ----------------------------------------------------------------------------
# Kernel B: H = X @ W + b   (row-tiled Linear, computed once per layer)
# ----------------------------------------------------------------------------
def _linear_kernel(x_ref, w_ref, b_ref, o_ref):
    h = jnp.dot(x_ref[...], w_ref[...], preferred_element_type=jnp.float32)
    o_ref[...] = (h + b_ref[...]).astype(o_ref.dtype)


def linear_pallas(X, W_t, b2, *, tile, out_dtype, vmem_limit):
    Np, Cin = X.shape
    Cout = W_t.shape[1]
    cost = pl.CostEstimate(
        flops=2 * Np * Cin * Cout,
        transcendentals=0,
        bytes_accessed=int(X.size * X.dtype.itemsize
                           + W_t.size * W_t.dtype.itemsize
                           + b2.size * b2.dtype.itemsize
                           + Np * Cout * jnp.dtype(out_dtype).itemsize),
    )
    return pl.pallas_call(
        _linear_kernel,
        out_shape=jax.ShapeDtypeStruct((Np, Cout), out_dtype),
        grid=(Np // tile,),
        in_specs=[
            pl.BlockSpec((tile, Cin), lambda i: (i, 0)),   # Cin = full dim (no pad)
            pl.BlockSpec((Cin, Cout), lambda i: (0, 0)),
            pl.BlockSpec((1, Cout), lambda i: (0, 0)),
        ],
        out_specs=pl.BlockSpec((tile, Cout), lambda i: (i, 0)),
        compiler_params=pltpu.CompilerParams(
            dimension_semantics=("parallel",),
            vmem_limit_bytes=vmem_limit,
        ),
        cost_estimate=cost,
    )(X, W_t, b2)


# ----------------------------------------------------------------------------
# Kernel C: out = (relu?)(A @ H)  tiled over (row_tiles, k_tiles)
#   - resident variant: H lives fully in VMEM (DMA'd once), k-chunk sliced
#     in-kernel with pl.ds.
#   - streaming variant: (tk, Cout) H blocks per k step (fallback for huge H).
# ----------------------------------------------------------------------------
def _spmm_resident_kernel(a_ref, h_ref, o_ref, acc_ref, *, tk, relu):
    k = pl.program_id(1)

    @pl.when(k == 0)
    def _():
        acc_ref[...] = jnp.zeros_like(acc_ref)

    start = pl.multiple_of(k * tk, tk)
    h_blk = h_ref[pl.ds(start, tk), :]
    acc_ref[...] += jnp.dot(a_ref[...], h_blk, preferred_element_type=jnp.float32)

    @pl.when(k == pl.num_programs(1) - 1)
    def _():
        out = acc_ref[...]
        if relu:
            out = jnp.maximum(out, 0.0)
        o_ref[...] = out.astype(o_ref.dtype)


def _spmm_stream_kernel(a_ref, h_ref, o_ref, acc_ref, *, relu):
    k = pl.program_id(1)

    @pl.when(k == 0)
    def _():
        acc_ref[...] = jnp.zeros_like(acc_ref)

    acc_ref[...] += jnp.dot(a_ref[...], h_ref[...],
                            preferred_element_type=jnp.float32)

    @pl.when(k == pl.num_programs(1) - 1)
    def _():
        out = acc_ref[...]
        if relu:
            out = jnp.maximum(out, 0.0)
        o_ref[...] = out.astype(o_ref.dtype)


def spmm_pallas(A, H, *, tm, tk, relu, out_dtype, vmem_limit):
    Np = A.shape[0]
    Cout = H.shape[1]
    n_row = Np // tm
    n_k = Np // tk
    h_bytes = H.size * H.dtype.itemsize
    # keep H resident (DMA'd once) whenever it fits comfortably in the budget
    resident = 2 * h_bytes <= vmem_limit // 3

    if resident:
        h_spec = pl.BlockSpec((Np, Cout), lambda i, k: (0, 0))   # constant index
        kernel = functools.partial(_spmm_resident_kernel, tk=tk, relu=relu)
        h_stream_bytes = h_bytes
    else:
        h_spec = pl.BlockSpec((tk, Cout), lambda i, k: (k, 0))
        kernel = functools.partial(_spmm_stream_kernel, relu=relu)
        h_stream_bytes = n_row * h_bytes

    cost = pl.CostEstimate(
        flops=2 * Np * Np * Cout,
        transcendentals=0,
        bytes_accessed=int(A.size * A.dtype.itemsize + h_stream_bytes
                           + Np * Cout * jnp.dtype(out_dtype).itemsize),
    )
    return pl.pallas_call(
        kernel,
        out_shape=jax.ShapeDtypeStruct((Np, Cout), out_dtype),
        grid=(n_row, n_k),                              # reduction axis last
        in_specs=[
            pl.BlockSpec((tm, tk), lambda i, k: (i, k)),  # A tile
            h_spec,                                       # H (resident or streamed)
        ],
        out_specs=pl.BlockSpec((tm, Cout), lambda i, k: (i, 0)),
        scratch_shapes=[pltpu.VMEM((tm, Cout), jnp.float32)],
        compiler_params=pltpu.CompilerParams(
            dimension_semantics=("parallel", "arbitrary"),
            vmem_limit_bytes=vmem_limit,
        ),
        cost_estimate=cost,
    )(A, H)


# ----------------------------------------------------------------------------
# Graph preprocessing (plain JAX) - built ONCE per graph, outside the step
# ----------------------------------------------------------------------------
def build_norm_adj(edge_index, num_nodes, n_pad, alpha, beta, self_loops=True,
                   dtype=jnp.bfloat16):
    """Dense A s.t. A @ h == DirectedGCNConv.propagate(edge_index, x=h, norm)."""
    row, col = edge_index[0], edge_index[1]
    if self_loops:
        loop = jnp.arange(num_nodes, dtype=edge_index.dtype)
        row = jnp.concatenate([row, loop])
        col = jnp.concatenate([col, loop])
    in_deg = jnp.zeros((num_nodes,), jnp.float32).at[col].add(1.0)
    out_deg = jnp.zeros((num_nodes,), jnp.float32).at[row].add(1.0)
    # zero-degree guard: such entries are never gathered by a real edge
    in_norm_inv = jnp.where(in_deg > 0, jnp.power(in_deg, -alpha), 0.0)
    out_norm_inv = jnp.where(out_deg > 0, jnp.power(out_deg, -beta), 0.0)
    norm = in_norm_inv[col] * out_norm_inv[row]
    # out[i] = sum_{edges j->i} norm * h[j]  =>  A[i, j] accumulates norm
    A = jnp.zeros((n_pad, n_pad), jnp.float32).at[col, row].add(norm)
    return A.astype(dtype)


def prepare_graph(edge_index, num_nodes, *, alpha=1.0, beta=0.0, self_loops=True):
    """Forward + reversed-edge normalized adjacencies (cache these per graph)."""
    n_pad = _choose_padding(num_nodes)
    A_fwd = build_norm_adj(edge_index, num_nodes, n_pad, alpha, beta, self_loops)
    A_rev = build_norm_adj(edge_index[::-1], num_nodes, n_pad, alpha, beta,
                           self_loops)
    return A_fwd, A_rev


# ----------------------------------------------------------------------------
# DirectedGCNConvEncoder forward (takes precomputed adjacencies)
# ----------------------------------------------------------------------------
def directed_gcn_conv_encoder(params, s, t, A_fwd, A_rev):
    N, Cin = s.shape
    n_pad = A_fwd.shape[0]
    Chid = params["src_b1"].shape[0]
    Cout = params["src_b2"].shape[0]

    chid_p = _round_up(Chid, LANE)
    cout_p = _round_up(Cout, LANE)
    tm = _largest_divisor_tile(n_pad, MAX_TM)
    tk = _largest_divisor_tile(n_pad, MAX_TK)
    vmem_limit = _vmem_limit_bytes()
    fused = n_pad <= FUSE_MAX_NODES

    # zero padding keeps results exact: padded A rows/cols are zero, so padded
    # H rows/cols never contribute to real outputs.
    s_p = _pad_to(s, (n_pad, Cin)).astype(jnp.bfloat16)
    t_p = _pad_to(t, (n_pad, Cin)).astype(jnp.bfloat16)

    def w_pad(name, ci, co):
        return _pad_to(params[name], (ci, co)).astype(jnp.bfloat16)

    def b_pad(name, co):
        return _pad_to(params[name].reshape(1, -1), (1, co)).astype(jnp.float32)

    def layer(A, X, w_name, b_name, ci, co, relu, out_dtype):
        W = w_pad(w_name, ci, co)
        b = b_pad(b_name, co)
        if fused:
            return fused_layer_pallas(A, X, W, b, relu=relu, out_dtype=out_dtype,
                                      vmem_limit=vmem_limit)
        H = linear_pallas(X, W, b, tile=tm, out_dtype=jnp.bfloat16,
                          vmem_limit=vmem_limit)
        return spmm_pallas(A, H, tm=tm, tk=tk, relu=relu, out_dtype=out_dtype,
                           vmem_limit=vmem_limit)

    # SourceGCNConvEncoder: relu(conv1(s, ei)) -> conv2(., flip(ei))
    s1 = layer(A_fwd, s_p, "src_W1", "src_b1", Cin, chid_p, True, jnp.bfloat16)
    s2 = layer(A_rev, s1, "src_W2", "src_b2", chid_p, cout_p, False, jnp.float32)

    # TargetGCNConvEncoder: relu(conv1(t, flip(ei))) -> conv2(., ei)
    t1 = layer(A_rev, t_p, "tgt_W1", "tgt_b1", Cin, chid_p, True, jnp.bfloat16)
    t2 = layer(A_fwd, t1, "tgt_W2", "tgt_b2", chid_p, cout_p, False, jnp.float32)

    return s2[:N, :Cout], t2[:N, :Cout]


# ----------------------------------------------------------------------------
# Deterministic parameter init (Linear(in, hid), Linear(hid, out); W stored
# pre-transposed as (Cin, Cout))
# ----------------------------------------------------------------------------
def init_params(key, in_channels, hidden_channels, out_channels):
    keys = jax.random.split(key, 8)

    def lin(kw, kb, cin, cout):
        bound = 1.0 / jnp.sqrt(jnp.float32(cin))
        W_t = jax.random.uniform(kw, (cin, cout), jnp.float32, -bound, bound)
        b = jax.random.uniform(kb, (cout,), jnp.float32, -bound, bound)
        return W_t, b

    p = {}
    p["src_W1"], p["src_b1"] = lin(keys[0], keys[1], in_channels, hidden_channels)
    p["src_W2"], p["src_b2"] = lin(keys[2], keys[3], hidden_channels, out_channels)
    p["tgt_W1"], p["tgt_b1"] = lin(keys[4], keys[5], in_channels, hidden_channels)
    p["tgt_W2"], p["tgt_b2"] = lin(keys[6], keys[7], hidden_channels, out_channels)
    return p


# ----------------------------------------------------------------------------
# Pure-JAX f32 reference of the PyTorch module (for a tolerance check)
# ----------------------------------------------------------------------------
def reference_forward(params, s, t, edge_index, num_nodes, *, alpha=1.0,
                      beta=0.0, self_loops=True):
    def conv(x, ei, W_t, b):
        row, col = ei[0], ei[1]
        if self_loops:
            loop = jnp.arange(num_nodes, dtype=ei.dtype)
            row = jnp.concatenate([row, loop])
            col = jnp.concatenate([col, loop])
        h = x @ W_t + b
        in_deg = jnp.zeros((num_nodes,), jnp.float32).at[col].add(1.0)
        out_deg = jnp.zeros((num_nodes,), jnp.float32).at[row].add(1.0)
        in_inv = jnp.where(in_deg > 0, jnp.power(in_deg, -alpha), 0.0)
        out_inv = jnp.where(out_deg > 0, jnp.power(out_deg, -beta), 0.0)
        norm = in_inv[col] * out_inv[row]
        msg = norm[:, None] * h[row]
        return jnp.zeros((num_nodes, W_t.shape[1]), jnp.float32).at[col].add(msg)

    flip = edge_index[::-1]
    s1 = jax.nn.relu(conv(s, edge_index, params["src_W1"], params["src_b1"]))
    s2 = conv(s1, flip, params["src_W2"], params["src_b2"])
    t1 = jax.nn.relu(conv(t, flip, params["tgt_W1"], params["tgt_b1"]))
    t2 = conv(t1, edge_index, params["tgt_W2"], params["tgt_b2"])
    return s2, t2


if __name__ == "__main__":
    key = jax.random.PRNGKey(0)
    k_s, k_t, k_e, k_p = jax.random.split(key, 4)

    N = 16            # number of graph nodes
    E = 32            # number of directed edges
    in_channels = 8
    hidden_channels = 16
    out_channels = 8

    s = jax.random.normal(k_s, (N, in_channels), jnp.float32)
    t = jax.random.normal(k_t, (N, in_channels), jnp.float32)
    edge_index = jax.random.randint(k_e, (2, E), 0, N, dtype=jnp.int32)

    params = init_params(k_p, in_channels, hidden_channels, out_channels)

    # Graph preprocessing built once per graph (cached across steps).
    prep = jax.jit(functools.partial(prepare_graph, num_nodes=N,
                                     alpha=1.0, beta=0.0, self_loops=True))
    A_fwd, A_rev = prep(edge_index)
    jax.block_until_ready((A_fwd, A_rev))

    fwd = jax.jit(directed_gcn_conv_encoder)
    s_out, t_out = fwd(params, s, t, A_fwd, A_rev)
    jax.block_until_ready((s_out, t_out))

    assert s_out.shape == (N, out_channels)
    assert t_out.shape == (N, out_channels)
    assert bool(jnp.all(jnp.isfinite(s_out))) and bool(jnp.all(jnp.isfinite(t_out)))

    # tolerance check against the f32 pure-JAX reference (bf16 operand path)
    s_ref, t_ref = jax.jit(functools.partial(
        reference_forward, num_nodes=N, alpha=1.0, beta=0.0, self_loops=True))(
        params, s, t, edge_index)

    def max_rel_err(a, b):
        return float(jnp.max(jnp.abs(a - b)) / (jnp.max(jnp.abs(b)) + 1e-6))

    assert max_rel_err(s_out, s_ref) < 5e-2, max_rel_err(s_out, s_ref)
    assert max_rel_err(t_out, t_ref) < 5e-2, max_rel_err(t_out, t_ref)

    print("KERNEL_OK")
</pallas_src>

<mosaic_0001>
module attributes {stable_mosaic.version = 11 : i64} {
  func.func private @main(%arg0: i32) attributes {dimension_semantics = [#tpu.dimension_semantics<core_parallel>], iteration_bounds = array<i64: 2>, tpu.core_type = #tpu.core_type<sc_scalar_subcore>, window_params = []} {
    return
  }
}

module attributes {stable_mosaic.version = 11 : i64} {
  func.func private @main(%arg0: i32) attributes {dimension_semantics = [#tpu.dimension_semantics<core_parallel>], iteration_bounds = array<i64: 2>, tpu.core_type = #tpu.core_type<sc_scalar_subcore>, window_params = []} {
    return
  }
}

</mosaic_0001>

<bundles_post_ra>
// kernel: mul.2
= control target key start
LH: loop header
LB: loop body
LE: loop exit
PB: predicated region body
PF: predicated region fallthrough
CT: control target
= control target key end

     0   :  { %s34_s0 = inlined_call_operand.vmem [shape: f32[48], index: 0, kind: input, shape index: {}]   ;;  %s35_s1 = inlined_call_operand.vmem [shape: f32[48], index: 1, kind: input, shape index: {}]   ;;  %s36_s2 = inlined_call_operand.vmem [shape: f32[48], index: 2, kind: output, shape index: {}]  }
   0x1   :  { %v3_v0 = vld [vmem:[%s34_s0] sm:$0x1] }
   0x2   :  { %v4_v1 = vld [vmem:[%s35_s1] sm:$0x1] }
   0x3   :  { %v7_v2 = vmul.f32 %v4_v1, %v3_v0 }
   0x5   :  { %9 = vst [vmem:[%s36_s2] sm:$0x1] %v7_v2 }

</bundles_post_ra>
